<compile_context>
chip_gen: v5e
topology: v5e:2x2
jax: 0.10.0
libtpu: 0.0.40
codegen_flags: <defaults>
</compile_context>

<pallas_src>
import functools

import jax
import jax.numpy as jnp
from jax import lax
from jax.experimental import pallas as pl
from jax.experimental.pallas import tpu as pltpu


def _convcc3_kernel(x_ref, w_ref, b_ref, m_ref, o_ref, *, NB, W):
    # x_ref: (NB, Cin, HW)   compute dtype (bf16/f32), pixels on lanes
    # w_ref: (Cout, 5*Cin)   folded tap weights [center | w-1 | w+1 | h-1 | h+1]
    # b_ref: (Cout, 1)       folded bias (f32)
    # m_ref: (4, HW)         0/1 boundary masks [w-1, w+1, h-1, h+1]
    # o_ref: (NB, Cout, HW)
    HW = o_ref.shape[2]

    # Hoisted once per grid step (shared by every image in the batch block).
    w = w_ref[...]
    bias = b_ref[...]
    m_wl = m_ref[0:1, :]
    m_wr = m_ref[1:2, :]
    m_hu = m_ref[2:3, :]
    m_hd = m_ref[3:4, :]

    def body(b, carry):
        x = x_ref[b]                                            # (Cin, HW)
        # Shift the *inputs* (XLU lane rotate) and zero the halo; the per-pixel
        # matmul commutes with spatial shifts, so this exactly reproduces the
        # convolutions' zero padding.
        xs = jnp.concatenate(
            [
                x,                                              # tap at (h, w)
                pltpu.roll(x, shift=1, axis=1) * m_wl,          # reads x(h, w-1)
                pltpu.roll(x, shift=HW - 1, axis=1) * m_wr,     # reads x(h, w+1)
                pltpu.roll(x, shift=W, axis=1) * m_hu,          # reads x(h-1, w)
                pltpu.roll(x, shift=HW - W, axis=1) * m_hd,     # reads x(h+1, w)
            ],
            axis=0,
        )                                                       # (5*Cin, HW)
        y = jnp.dot(w, xs, preferred_element_type=jnp.float32)  # (Cout, HW)
        o_ref[b] = (y + bias).astype(o_ref.dtype)
        return carry

    lax.fori_loop(0, NB, body, None, unroll=True)


def _choose_batch_block(n, per_image_bytes, target_bytes=1 << 20):
    """Largest divisor of n whose per-step HBM traffic stays under target_bytes,
    preferring >= 2 grid steps so both v7x TensorCores get work."""
    divisors = [d for d in range(1, n + 1) if n % d == 0]
    fitting = [d for d in divisors if d * per_image_bytes <= target_bytes] or [1]
    nb = max(fitting)
    if n // nb < 2:
        two_step = [d for d in fitting if n // d >= 2]
        if two_step:
            nb = max(two_step)
    return nb


def convcc3_pallas(x_nchw, params, compute_dtype=jnp.bfloat16):
    """x_nchw: (N, Cin, H, W) float32.  Returns (N, Cout, H, W) in x.dtype."""
    w13, b13, w31, b31, w11, b11, wout, bout = params
    N, Cin, H, W = x_nchw.shape
    Cout = w13.shape[0]
    HW = H * W

    # ---- host-side folding (tiny, done once) ----
    wout2d = wout[:, :, 0, 0]                                       # (Cout, Cout)
    taps = (
        w13[:, :, 0, 1] + w31[:, :, 1, 0] + w11[:, :, 0, 0],        # center
        w13[:, :, 0, 0],                                            # reads x(h, w-1)
        w13[:, :, 0, 2],                                            # reads x(h, w+1)
        w31[:, :, 0, 0],                                            # reads x(h-1, w)
        w31[:, :, 2, 0],                                            # reads x(h+1, w)
    )
    w_eff = jnp.concatenate([wout2d @ t for t in taps], axis=1)      # (Cout, 5*Cin) f32
    b_eff = (wout2d @ (b13 + b31 + b11) + bout).reshape(Cout, 1)     # (Cout, 1) f32

    # 0/1 boundary masks over the flat pixel index (no in-kernel iota / mod).
    p = jnp.arange(HW, dtype=jnp.int32)
    col = p % W
    masks = jnp.stack(
        [col != 0, col != W - 1, p >= W, p < (H - 1) * W]
    ).astype(compute_dtype)                                          # (4, HW)

    # NCHW consumed directly; contiguous reshape is free (no transpose, no pad).
    x_flat = x_nchw.reshape(N, Cin, HW).astype(compute_dtype)
    w_eff = w_eff.astype(compute_dtype)

    cb = jnp.dtype(compute_dtype).itemsize
    ob = jnp.dtype(x_nchw.dtype).itemsize
    per_image_bytes = HW * (Cin * cb + Cout * ob)
    NB = _choose_batch_block(N, per_image_bytes)

    # VMEM budget: double-buffered x/out blocks + weights/bias/masks + live shifted
    # stack + live f32 y.  Re-derived for v7x's 64 MiB physical VMEM; capped at 48 MiB.
    est = (2 * NB * Cin * HW * cb + 2 * NB * Cout * HW * ob
           + 2 * (5 * Cin * Cout * cb + Cout * 4 + 4 * HW * cb)
           + 5 * Cin * HW * cb + Cout * HW * 4)
    vmem_limit = int(min(max(4 * est, 8 << 20), 48 << 20))

    kernel = functools.partial(_convcc3_kernel, NB=NB, W=W)
    out_flat = pl.pallas_call(
        kernel,
        out_shape=jax.ShapeDtypeStruct((N, Cout, HW), x_nchw.dtype),
        grid=(N // NB,),
        in_specs=[
            # TODO(synk): if the (now larger) x DMA shows up exposed at production
            # shapes, raise this spec to pipeline_mode=pl.Buffered(3).
            pl.BlockSpec((NB, Cin, HW), lambda n: (n, 0, 0)),
            pl.BlockSpec((Cout, 5 * Cin), lambda n: (0, 0)),
            pl.BlockSpec((Cout, 1), lambda n: (0, 0)),
            pl.BlockSpec((4, HW), lambda n: (0, 0)),
        ],
        out_specs=pl.BlockSpec((NB, Cout, HW), lambda n: (n, 0, 0)),
        compiler_params=pltpu.CompilerParams(
            dimension_semantics=("parallel",),
            vmem_limit_bytes=vmem_limit),
    )(x_flat, w_eff, b_eff, masks)

    # Contiguous reshape back to NCHW (free).
    return out_flat.reshape(N, Cout, H, W)


def _reference_nchw(x, params):
    """Pure-JAX reference matching the PyTorch forward (for validation)."""
    w13, b13, w31, b31, w11, b11, wout, bout = params
    dn = ('NCHW', 'OIHW', 'NCHW')
    conv = lambda inp, w, pad: lax.conv_general_dilated(
        inp, w, (1, 1), pad, dimension_numbers=dn)
    x13 = conv(x, w13, [(0, 0), (1, 1)]) + b13[None, :, None, None]
    x31 = conv(x, w31, [(1, 1), (0, 0)]) + b31[None, :, None, None]
    x11 = conv(x, w11, [(0, 0), (0, 0)]) + b11[None, :, None, None]
    mid = x13 + x31 + x11
    out = conv(mid, wout, [(0, 0), (0, 0)]) + bout[None, :, None, None]
    return out


def init_params(key, in_c, out_c):
    ks = jax.random.split(key, 8)
    s = 0.1
    w13 = s * jax.random.normal(ks[0], (out_c, in_c, 1, 3), jnp.float32)
    b13 = s * jax.random.normal(ks[1], (out_c,), jnp.float32)
    w31 = s * jax.random.normal(ks[2], (out_c, in_c, 3, 1), jnp.float32)
    b31 = s * jax.random.normal(ks[3], (out_c,), jnp.float32)
    w11 = s * jax.random.normal(ks[4], (out_c, in_c, 1, 1), jnp.float32)
    b11 = s * jax.random.normal(ks[5], (out_c,), jnp.float32)
    wout = s * jax.random.normal(ks[6], (out_c, out_c, 1, 1), jnp.float32)
    bout = s * jax.random.normal(ks[7], (out_c,), jnp.float32)
    return (w13, b13, w31, b31, w11, b11, wout, bout)


if __name__ == "__main__":
    key = jax.random.PRNGKey(0)
    kx, kp = jax.random.split(key)

    N, Cin, Cout, H, W = 2, 4, 8, 16, 16
    x = jax.random.normal(kx, (N, Cin, H, W), jnp.float32)
    params = init_params(kp, Cin, Cout)

    ref = _reference_nchw(x, params)

    # f32 path: bit-for-bit-ish check of the structure.
    out_f32 = jax.block_until_ready(
        convcc3_pallas(x, params, compute_dtype=jnp.float32))
    assert out_f32.shape == (N, Cout, H, W)
    assert jnp.allclose(out_f32, ref, atol=1e-4, rtol=1e-4), \
        f"f32 max abs err = {jnp.max(jnp.abs(out_f32 - ref))}"

    # bf16 path (default, production config): looser tolerance for the bf16 cast.
    out_bf16 = jax.block_until_ready(convcc3_pallas(x, params))
    assert out_bf16.shape == (N, Cout, H, W)
    assert jnp.allclose(out_bf16, ref, atol=2e-2, rtol=2e-2), \
        f"bf16 max abs err = {jnp.max(jnp.abs(out_bf16 - ref))}"

    print("KERNEL_OK")
</pallas_src>

<mosaic_0001>
module attributes {stable_mosaic.version = 11 : i64} {
  func.func @_convcc3_kernel(%arg0: i32, %arg1: memref<1x4x256xf32, #tpu.memory_space<vmem>>, %arg2: memref<8x20xf32, #tpu.memory_space<vmem>>, %arg3: memref<8x1xf32, #tpu.memory_space<vmem>>, %arg4: memref<4x256xf32, #tpu.memory_space<vmem>>, %arg5: memref<1x8x256xf32, #tpu.memory_space<vmem>>) attributes {dimension_semantics = [#tpu.dimension_semantics<parallel>], iteration_bounds = array<i64: 2>, scalar_prefetch = 0 : i64, scratch_operands = 0 : i64, tpu.core_type = #tpu.core_type<tc>, window_params = [{transform_indices = @transform_0, window_bounds = array<i64: 1, 4, 256>}, {pipeline_mode = #tpu.pipeline_mode<synchronous>, transform_indices = @transform_1, window_bounds = array<i64: 8, 20>}, {pipeline_mode = #tpu.pipeline_mode<synchronous>, transform_indices = @transform_2, window_bounds = array<i64: 8, 1>}, {pipeline_mode = #tpu.pipeline_mode<synchronous>, transform_indices = @transform_3, window_bounds = array<i64: 4, 256>}, {transform_indices = @transform_4, window_bounds = array<i64: 1, 8, 256>}]} {
    %c0 = arith.constant 0 : index
    %c0_0 = arith.constant 0 : index
    %0 = vector.load %arg2[%c0, %c0_0] : memref<8x20xf32, #tpu.memory_space<vmem>>, vector<8x20xf32>
    %c0_1 = arith.constant 0 : index
    %c0_2 = arith.constant 0 : index
    %1 = vector.load %arg3[%c0_1, %c0_2] : memref<8x1xf32, #tpu.memory_space<vmem>>, vector<8x1xf32>
    %c0_3 = arith.constant 0 : index
    %c0_4 = arith.constant 0 : index
    %2 = vector.load %arg4[%c0_3, %c0_4] : memref<4x256xf32, #tpu.memory_space<vmem>>, vector<1x256xf32>
    %c1 = arith.constant 1 : index
    %c0_5 = arith.constant 0 : index
    %3 = vector.load %arg4[%c1, %c0_5] : memref<4x256xf32, #tpu.memory_space<vmem>>, vector<1x256xf32>
    %c2 = arith.constant 2 : index
    %c0_6 = arith.constant 0 : index
    %4 = vector.load %arg4[%c2, %c0_6] : memref<4x256xf32, #tpu.memory_space<vmem>>, vector<1x256xf32>
    %c3 = arith.constant 3 : index
    %c0_7 = arith.constant 0 : index
    %5 = vector.load %arg4[%c3, %c0_7] : memref<4x256xf32, #tpu.memory_space<vmem>>, vector<1x256xf32>
    %c0_i32 = arith.constant 0 : i32
    %6 = arith.index_cast %c0_i32 : i32 to index
    %c0_8 = arith.constant 0 : index
    %c0_9 = arith.constant 0 : index
    %7 = vector.load %arg1[%6, %c0_8, %c0_9] : memref<1x4x256xf32, #tpu.memory_space<vmem>>, vector<1x4x256xf32>
    %8 = vector.shape_cast %7 : vector<1x4x256xf32> to vector<4x256xf32>
    %c1_i32 = arith.constant 1 : i32
    %9 = tpu.dynamic_rotate %8 by %c1_i32 dim 1 : vector<4x256xf32>, i32 -> vector<4x256xf32>
    %10 = vector.broadcast %2 : vector<1x256xf32> to vector<4x256xf32>
    %11 = arith.mulf %9, %10 : vector<4x256xf32>
    %c255_i32 = arith.constant 255 : i32
    %12 = tpu.dynamic_rotate %8 by %c255_i32 dim 1 : vector<4x256xf32>, i32 -> vector<4x256xf32>
    %13 = vector.broadcast %3 : vector<1x256xf32> to vector<4x256xf32>
    %14 = arith.mulf %12, %13 : vector<4x256xf32>
    %c16_i32 = arith.constant 16 : i32
    %15 = tpu.dynamic_rotate %8 by %c16_i32 dim 1 : vector<4x256xf32>, i32 -> vector<4x256xf32>
    %16 = vector.broadcast %4 : vector<1x256xf32> to vector<4x256xf32>
    %17 = arith.mulf %15, %16 : vector<4x256xf32>
    %c240_i32 = arith.constant 240 : i32
    %18 = tpu.dynamic_rotate %8 by %c240_i32 dim 1 : vector<4x256xf32>, i32 -> vector<4x256xf32>
    %19 = vector.broadcast %5 : vector<1x256xf32> to vector<4x256xf32>
    %20 = arith.mulf %18, %19 : vector<4x256xf32>
    %21 = tpu.concatenate %8, %11, %14, %17, %20 in 0 : vector<4x256xf32>, vector<4x256xf32>, vector<4x256xf32>, vector<4x256xf32>, vector<4x256xf32> -> vector<20x256xf32>
    %cst = arith.constant dense<0.000000e+00> : vector<8x256xf32>
    %22 = tpu.matmul %0, %21, %cst {dimension_numbers = #tpu.dot_dimension_numbers<[1], [0], [0], [1], [0, 0, 1, 1], [], []>} : vector<8x20xf32>, vector<20x256xf32>, vector<8x256xf32> -> vector<8x256xf32>
    %23 = vector.broadcast %1 : vector<8x1xf32> to vector<8x256xf32>
    %24 = arith.addf %22, %23 : vector<8x256xf32>
    %25 = arith.index_cast %c0_i32 : i32 to index
    %c0_10 = arith.constant 0 : index
    %c0_11 = arith.constant 0 : index
    %26 = vector.load %arg5[%25, %c0_10, %c0_11] : memref<1x8x256xf32, #tpu.memory_space<vmem>>, vector<1x8x256xf32>
    %27 = vector.shape_cast %26 : vector<1x8x256xf32> to vector<8x256xf32>
    %28 = vector.shape_cast %24 : vector<8x256xf32> to vector<1x8x256xf32>
    tpu.vector_store %arg5[%25, %c0_10, %c0_11], %28 {strides = array<i32>} : memref<1x8x256xf32, #tpu.memory_space<vmem>>, vector<1x8x256xf32>,
    %c1_i32_12 = arith.constant 1 : i32
    return
  }
  func.func @transform_0(%arg0: i32) -> (i32, i32, i32) {
    %c0_i32 = arith.constant 0 : i32
    %c0_i32_0 = arith.constant 0 : i32
    %c0_i32_1 = arith.constant 0 : i32
    return %arg0, %c0_i32, %c0_i32_0 : i32, i32, i32
  }
  func.func @transform_1(%arg0: i32) -> (i32, i32) {
    %c0_i32 = arith.constant 0 : i32
    %c0_i32_0 = arith.constant 0 : i32
    %c0_i32_1 = arith.constant 0 : i32
    return %c0_i32, %c0_i32_0 : i32, i32
  }
  func.func @transform_2(%arg0: i32) -> (i32, i32) {
    %c0_i32 = arith.constant 0 : i32
    %c0_i32_0 = arith.constant 0 : i32
    %c0_i32_1 = arith.constant 0 : i32
    return %c0_i32, %c0_i32_0 : i32, i32
  }
  func.func @transform_3(%arg0: i32) -> (i32, i32) {
    %c0_i32 = arith.constant 0 : i32
    %c0_i32_0 = arith.constant 0 : i32
    %c0_i32_1 = arith.constant 0 : i32
    return %c0_i32, %c0_i32_0 : i32, i32
  }
  func.func @transform_4(%arg0: i32) -> (i32, i32, i32) {
    %c0_i32 = arith.constant 0 : i32
    %c0_i32_0 = arith.constant 0 : i32
    %c0_i32_1 = arith.constant 0 : i32
    return %arg0, %c0_i32, %c0_i32_0 : i32, i32, i32
  }
}

</mosaic_0001>

<bundles_post_ra>
// kernel: tpu_custom_call.1
= control target key start
LH: loop header
LB: loop body
LE: loop exit
PB: predicated region body
PF: predicated region fallthrough
CT: control target
= control target key end

     0   :  { %9 = vsyncpa [#allocation3], 0  ;;  %s896_s0 = inlined_call_operand.hbm [shape: f32[2,4,256], index: 0, kind: input, shape index: {}]   ;;  %s897_s1 = inlined_call_operand.vmem [shape: f32[8,20], index: 1, kind: input, shape index: {}]   ;;  %s898_s2 = inlined_call_operand.vmem [shape: f32[8,1], index: 2, kind: input, shape index: {}]   ;;  %s899_s3 = inlined_call_operand.hbm [shape: f32[4,256], index: 3, kind: input, shape index: {}]   ;;  %s900_s4 = inlined_call_operand.hbm [shape: f32[2,8,256], index: 4, kind: output, shape index: {}]  }
   0x1   :  { %11 = vsyncpa [#allocation3 + $0x1], 0 }
   0x2   :  { %12 = vsyncpa [#allocation6], 0 }
   0x3   :  { %13 = vsyncpa [#allocation4], 0 }
   0x4   :  { %15 = vsyncpa [#allocation4 + $0x1], 0  ;;  %s745_s15 = smov 0   ;;  %s747_s16 = smov 0  }
   0x5   :  { %s749_s17 = smov 0   ;;  %s751_s18 = smov 0  }
   0x6 LB: > { %s766_s19 = sadd.s32 4294967295, %s712_s18   ;;  %s496_s20 = sadd.s32 4294967294, %s712_s18   ;;  %s712_s18 = sphi %s751_s18, %s910_s18   ;;  %s708_s17 = sphi %s749_s17, %s909_s17   ;;  %s704_s16 = sphi %s747_s16, %s908_s16   ;;  %s700_s15 = sphi %s745_s15, %s907_s15  }
   0x7   : > { %p41_p0 = scmp.ne.s32.totalorder %s704_s16, %s700_s15  ;;  %p42_p1 = scmp.eq.s32.totalorder %s766_s19, 0 }
   0x8   : > { %p128_p2 = scmp.eq.s32.totalorder %s766_s19, 1  ;;  %p134_p3 = scmp.eq.s32.totalorder %s496_s20, 1 }
   0x9   : > { %p775_p4 = por %p42_p1, %p41_p0  ;;  %p497_p5 = scmp.ge.s32.totalorder %s712_s18, 1 }
   0xa   : > { %p780_p6 = por %p134_p3, %p41_p0  ;;  %p141_p7 = scmp.lt.s32.totalorder %s712_s18, 3 }
   0xb   : > { %s159_s25 = sshll.u32 %s899_s3, 4  ;;  %s714_s27 = smov [#allocation5]   ;;  %s160_s25 = int_to_ptr.hbm [resolvable:$true] %s159_s25 }
   0xc   : > { %p788_p8 = pnand %p497_p5, %p141_p7  ;;  %s161_s28 = sshll.u32 %s714_s27, 4  ;;  %s162_s28 = int_to_ptr.vmem [resolvable:$true] %s161_s28 }
   0xd   : > { %s798_s29 = sadd.s32 1, %s712_s18   ;;  %s28_s30 = sadd.s32 1, %s708_s17 }
   0xe   : > { %p526_p10 = pneg %p788_p8  ;;  %s25_s5 = ssub.s32 %s712_s18, %s798_s29 }
   0xf   : > { %p26_p12 = scmp.eq.s32.totalorder %s25_s5, 0  ;;  %p35_p13 = scmp.ne.s32.totalorder %s708_s17, %s704_s16 }
  0x10   : > { %p527_p11 = pnand %p526_p10, %p42_p1  ;;  %p36_p0 = scmp.eq.s32.totalorder %s712_s18, 0 }
  0x11   : > { %s807_s6 = scalar_select %p26_p12, %s708_s17, %s28_s30  }
  0x12   : > { %529 = dma.hbm_to_vmem [thread:$0]  (!%p527_p11), %s160_s25, 128, %s162_s28, [#allocation6]  }
  0x13   : > { %p811_p3 = por %p128_p2, %p35_p13  ;;  %p539_p5 = scmp.lt.s32.totalorder %s712_s18, 2 }
  0x14   : > { %s172_s8 = sand.u32 1, %s708_s17   ;;  %s516_s9 = sshll.u32 %s712_s18, 3 }
  0x15   : > { %p37_p7 = por %p36_p0, %p35_p13  ;;  %s500_s10 = sshll.u32 %s172_s8, 3 }
  0x16   : > { %s181_s13 = scalar_lea.hbm %s896_s0, %s516_s9  ;;  %s176_s20 = scalar_lea.vmem [#allocation2], %s500_s10 }
  0x17   : > { %s183_s14 = sshll.u32 %s181_s13, 4  ;;  %s185_s23 = sshll.u32 %s176_s20, 4  ;;  %s184_s14 = int_to_ptr.hbm [resolvable:$true] %s183_s14  ;;  %s186_s23 = int_to_ptr.vmem [resolvable:$true] %s185_s23 }
  0x18   : > { %p821_p10 = pnand %p539_p5, %p37_p7  ;;  %s173_s25 = scalar_lea.sflag [#allocation3], %s172_s8 }
  0x19   : > { %s612_s27 = sshra.s32 %s184_s14, 4  ;;  %s619_s9 = scalar_lea.hbm %s896_s0, 16  ;;  %s613_s27 = int_to_ptr.hbm [resolvable:$true] %s612_s27 }
  0x1a   : > { %s614_s28 = scalar_lea.hbm %s613_s27, 8  ;;  %p616_p11 = pneg %p821_p10 }
  0x1b   : > { %p615_p2 = scmp.ne.s32.totalorder %s613_s27, %s614_s28  ;;  %p620_p0 = scmp.lt.s32.totalorder %s613_s27, %s896_s0 }
  0x1c   : > { %p621_p5 = scmp.lt.s32.totalorder %s619_s9, %s614_s28 }
  0x1d   : > { %p617_p12 = pnand %p616_p11, %p615_p2 }
  0x1e   : > { %p622_p7 = por %p621_p5, %p620_p0 }
  0x1f   : > { %p618_p13 = pneg %p617_p12 }
  0x21   : > { %p623_p9 = pnand %p622_p7, %p618_p13 }
  0x23   : > { %626 = shalt.err (!%p623_p9)
}
  0x24   : > { %533 = dma.hbm_to_vmem [thread:$0]  (!%p821_p10), %s184_s14, 128, %s186_s23, %s173_s25  }
  0x25   : > { %194 = sbr.rel (%p788_p8) target bundleno = 348 (0x15c), region = 36  ;;  %s838_s8 = sand.u32 (!%p788_p8), 1, %s704_s16  }
  0x26   : > { %s504_s12 = sshll.u32 (!%p788_p8), %s838_s8, 3  ;;  %s197_s13 = scalar_lea.sflag (!%p788_p8), [#allocation3], %s838_s8 }
  0x27   : > { %s200_s20 = scalar_lea.vmem (!%p788_p8), [#allocation2], %s504_s12 }
  0x2a   : > { %687 = dma.done.wait (%p775_p4), %s197_s13, 128  }
  0x2b   : > { %689 = vsyncadd (%p775_p4), %s197_s13, 4294967168 }
  0x2c   : > { %691 = dma.done.wait (%p42_p1), [#allocation6], 128  }
  0x2d   : > { %693 = vsyncadd (%p42_p1), [#allocation6], 4294967168  ;;  %v240_v0 = vld [vmem:[%s200_s20] sm:$0xff]  ;;  %s715_s26 = smov 1   ;;  %s716_s21 = smov 16   ;;  %v232_v9 = vld [vmem:[%s898_s2] sm:$0xff]  ;;  %v251_v13 = vlaneseq }
  0x2e   : > { %242 = vst [vmem:[#allocation1] ss:$2 sm:$0xff] %v240_v0  ;;  %s717_s14 = smov 112   ;;  %s718_s23 = smov 127   ;;  %v719_v10 = vmov 0   ;;  %vm337_vm3 = vcmask 1043456  }
  0x2f   : > { %580 = vset.pattern.permute.xlu2 %v719_v10  ;;  %581 = vset.pattern.permute.xlu0 %v719_v10  ;;  %v239_v15 = vld [vmem:[#allocation5 + $0x3] ss:$4 sm:$0x3]  ;;  %v252_v16 = vand.u32 127, %v251_v13  ;;  %v231_v57 = vld [vmem:[%s897_s1] sm:$0xff]  ;;  %vm347_vm5 = vcmask 162816  }
  0x30   : > { %v237_v17 = vld [vmem:[#allocation5 + $0x2] ss:$4 sm:$0x3]  ;;  %v233_v18 = vld [vmem:[#allocation5] ss:$4 sm:$0x3] }
  0x31   : > { %vm310_vm0 = vcmp.lt.s32.totalorder %v252_v16, 112  ;;  %v314_v20 = vperm.slane %v239_v15, 0  ;;  %v315_v21 = vperm.slane %v239_v15, 1  ;;  %vm253_vm1 = vcmp.lt.s32.totalorder %v252_v16, 1  ;;  %s506_s30 = sshll.u32 %s838_s8, 4  ;;  %s517_s5 = sshll.u32 %s766_s19, 4 }
  0x32   : > { %vm291_vm2 = vcmp.lt.s32.totalorder %v252_v16, 16  ;;  %v295_v23 = vperm.slane %v237_v17, 0  ;;  %v296_v24 = vperm.slane %v237_v17, 1  ;;  %v257_v25 = vperm.slane %v233_v18, 0  ;;  %s411_s11 = scalar_lea.hbm %s900_s4, %s517_s5  ;;  %s230_s12 = scalar_lea.vmem [#allocation7], %s506_s30 }
  0x33   : > { %v258_v27 = vperm.slane %v233_v18, 1  ;;  %v235_v36 = vld [vmem:[#allocation5 + $0x1] ss:$4 sm:$0x3]  ;;  %vm272_vm4 = vcmp.lt.s32.totalorder %v252_v16, 127  ;;  %s413_s13 = sshll.u32 %s230_s12, 4  ;;  %s414_s13 = int_to_ptr.vmem [resolvable:$true] %s413_s13 }
  0x34   : > { %v276_v42 = vperm.slane %v235_v36, 0  ;;  %v277_v43 = vperm.slane %v235_v36, 1  ;;  %s415_s20 = sshll.u32 %s411_s11, 4  ;;  %s662_s24 = scalar_lea.hbm %s900_s4, 32  ;;  %s416_s20 = int_to_ptr.hbm [resolvable:$true] %s415_s20 }
  0x35   : > { %v243_v1 = vld.sshfl [vmem:[#allocation1] sm:$0xff pattern:$0x75316420]  ;;  %v244_v2 = vld.sshfl [vmem:[#allocation1 + $0x8] sm:$0xff pattern:$0x75316420] }
  0x36   : > { %263 = vst [vmem:[#allocation1] ss:$2 sm:$0xff] %v240_v0  ;;  %247 = vrot.lane.b32.xlu2 %v243_v1, %s715_s26 }
  0x3d   : > { %v264_v3 = vld.sshfl [vmem:[#allocation1] sm:$0xff pattern:$0x75316420]  ;;  %v265_v4 = vld.sshfl [vmem:[#allocation1 + $0x8] sm:$0xff pattern:$0x75316420] }
  0x3e   : > { %282 = vst [vmem:[#allocation1] ss:$2 sm:$0xff] %v240_v0  ;;  %249 = vrot.lane.b32.xlu2 %v244_v2, %s715_s26  ;;  %s400_s26 = scalar_lea.sflag [#allocation4], %s838_s8 }
  0x45   : > { %v283_v5 = vld.sshfl [vmem:[#allocation1] sm:$0xff pattern:$0x75316420]  ;;  %v284_v6 = vld.sshfl [vmem:[#allocation1 + $0x8] sm:$0xff pattern:$0x75316420] }
  0x46   : > { %287 = vrot.lane.b32.xlu0 %v283_v5, %s716_s21  ;;  %301 = vst [vmem:[#allocation1] ss:$2 sm:$0xff] %v240_v0  ;;  %344 = vperm.xlu2 %580, %v232_v9  }
  0x4d   : > { %v302_v7 = vld.sshfl [vmem:[#allocation1] sm:$0xff pattern:$0x75316420]  ;;  %v303_v8 = vld.sshfl [vmem:[#allocation1 + $0x8] sm:$0xff pattern:$0x75316420] }
  0x4e   : > { %289 = vrot.lane.b32.xlu0 %v284_v6, %s716_s21  ;;  %306 = vrot.lane.b32.xlu1 %v302_v7, %s717_s14  ;;  %320 = vst [vmem:[#allocation1] ss:$2 sm:$0xff] %v240_v0  ;;  %s656_s21 = sshra.s32 %s416_s20, 4  ;;  %s657_s21 = int_to_ptr.hbm [resolvable:$true] %s656_s21 }
  0x4f   : > { %s658_s19 = scalar_lea.hbm %s657_s21, 16  ;;  %p663_p9 = scmp.lt.s32.totalorder %s657_s21, %s900_s4 }
  0x50   : > { %p659_p1 = scmp.ne.s32.totalorder %s657_s21, %s658_s19  ;;  %p664_p10 = scmp.lt.s32.totalorder %s662_s24, %s658_s19 }
  0x52   : > { %p660_p4 = pnand %p659_p1, %p811_p3  ;;  %p665_p2 = por %p664_p10, %p663_p9 }
  0x54   : > { %p661_p8 = pneg %p660_p4 }
  0x55   : > { %v321_v53 = vld.sshfl [vmem:[#allocation1] sm:$0xff pattern:$0x75316420]  ;;  %v322_v54 = vld.sshfl [vmem:[#allocation1 + $0x8] sm:$0xff pattern:$0x75316420] }
  0x56   : > { %308 = vrot.lane.b32.xlu1 %v303_v8, %s717_s14  ;;  %268 = vrot.lane.b32.xlu0 %v264_v3, %s718_s23  ;;  %p666_p11 = pnand %p665_p2, %p661_p8 }
  0x5e   : > { %270 = vrot.lane.b32.xlu1 %v265_v4, %s718_s23 }
  0x90   : > { %v248_v12 = vpop.permute.xlu2 %247 }
  0x98   : > { %v250_v22 = vpop.permute.xlu2 %249 }
  0x99   : > { %v254_v30 = vsel %vm253_vm1, %v248_v12, %v250_v22  ;;  %v255_v31 = vsel %vm253_vm1, %v250_v22, %v248_v12 }
  0x9a   : > { %v261_v37 = vmul.f32 %v257_v25, %v255_v31  ;;  %v262_v38 = vmul.f32 %v258_v27, %v254_v30 }
  0x9c   : > { %v327_v45 = vrot.slane %v261_v37, 4  ;;  %v328_v46 = vrot.slane %v262_v38, 4 }
  0x9e   : > { %v338_v58 = vsel %vm337_vm3, %v321_v53, %v327_v45  ;;  %v339_v59 = vsel %vm337_vm3, %v322_v54, %v328_v46 }
  0xa0   : > { %v345_v60 = vpop.permute.xlu2 %344 }
  0xb8   : > { %v288_v11 = vpop.permute.xlu0 %287 }
  0xc0   : > { %v307_v14 = vpop.permute.xlu1 %306  ;;  %v290_v19 = vpop.permute.xlu0 %289 }
  0xc1   : > { %v292_v34 = vsel %vm291_vm2, %v288_v11, %v290_v19  ;;  %v293_v35 = vsel %vm291_vm2, %v290_v19, %v288_v11 }
  0xc2   : > { %v299_v39 = vmul.f32 %v295_v23, %v293_v35  ;;  %v300_v40 = vmul.f32 %v296_v24, %v292_v34 }
  0xc4   : > { %v333_v49 = vrot.slane %v299_v39, 4  ;;  %v334_v50 = vrot.slane %v300_v40, 4 }
  0xc8   : > { %v309_v26 = vpop.permute.xlu1 %308  ;;  %v269_v41 = vpop.permute.xlu0 %268 }
  0xc9   : > { %v311_v28 = vsel %vm310_vm0, %v307_v14, %v309_v26  ;;  %v312_v29 = vsel %vm310_vm0, %v309_v26, %v307_v14 }
  0xca   : > { %v318_v32 = vmul.f32 %v314_v20, %v311_v28  ;;  %v319_v33 = vmul.f32 %v315_v21, %v312_v29 }
  0xcc   : > { %507 = vmatpush.msk.msra.mxu0 %vm337_vm3, %v318_v32  ;;  %509 = vmatpush.msk.msra.mxu1 %vm337_vm3, %v319_v33 }
  0xd0   : > { %v271_v44 = vpop.permute.xlu1 %270 }
  0xd1   : > { %v273_v47 = vsel %vm272_vm4, %v269_v41, %v271_v44  ;;  %v274_v48 = vsel %vm272_vm4, %v271_v44, %v269_v41 }
  0xd2   : > { %v280_v51 = vmul.f32 %v276_v42, %v273_v47  ;;  %v281_v52 = vmul.f32 %v277_v43, %v274_v48 }
  0xd4   : > { %v340_v55 = vsel %vm337_vm3, %v280_v51, %v333_v49  ;;  %v341_v56 = vsel %vm337_vm3, %v281_v52, %v334_v50 }
  0xd5   : > { %371 = vmatpush.msra.mxu0 %v340_v55  ;;  %391 = vmatpush.msra.mxu1 %v341_v56 }
  0xd7   : > { %372 = vmatpush.msra.mxu0 %v338_v58  ;;  %392 = vmatpush.msra.mxu1 %v339_v59 }
  0xd8   : > { %508 = vmatmul.msk.f32.vlgmr.msra.gmra.mxu0 %vm347_vm5, %v231_v57  ;;  %510 = vmatmul.msk.f32.vlgmr.msra.gmra.mxu1 %vm347_vm5, %v231_v57 }
 0x155   : > { %v374_v61 = vpop.f32.mrf.mxu0  ;;  %v394_v62 = vpop.f32.mrf.mxu1 }
 0x156   : > { %v375_v63 = vadd.f32 %v374_v61, %v345_v60  ;;  %v395_v0 = vadd.f32 %v394_v62, %v345_v60 }
 0x158   : > { %397 = vst [vmem:[%s230_s12] sm:$0xff] %v375_v63 }
 0x159   : > { %398 = vst [vmem:[%s230_s12 + $0x8] sm:$0xff] %v395_v0 }
 0x15a   : > { %669 = shalt.err (!%p666_p11)
}
 0x15b   : > { %524 = dma.vmem_to_hbm [thread:$0]  (%p811_p3), %s414_s13, 256, %s416_s20, %s400_s26  }
 0x15c PF: > { %s427_s8 = sand.u32 1, %s700_s15   ;;  %p906_p12 = scmp.ge.s32.totalorder %s712_s18, 2 }
 0x15d   : > { %s428_s28 = scalar_lea.sflag [#allocation4], %s427_s8 }
 0x15e   : > { %p535_p13 = pnand %p906_p12, %p780_p6 }
 0x160   : > { %p536_p0 = pneg %p535_p13 }
 0x162   : > { %695 = dma.done.wait (%p536_p0), %s428_s28, 256  }
 0x163   : > { %697 = vsyncadd (%p536_p0), %s428_s28, 4294967040  ;;  %p18_p5 = scmp.ge.s32.totalorder %s798_s29, 4   ;;  %s907_s15 = smov %s704_s16 }
 0x164   : > { %s908_s16 = smov %s708_s17  ;;  %s909_s17 = smov %s807_s6 }
 0x165   : > { %s910_s18 = smov %s798_s29  ;;  %20 = sbr.rel (!%p18_p5) target bundleno = 6 (0x6), region = 88 }
 0x16a   :  { %434 = vsyncpa [#allocation3], 1 }
 0x16b   :  { %436 = vsyncpa [#allocation3 + $0x1], 1 }
 0x16c   :  { %437 = vsyncpa [#allocation6], 1 }
 0x16d   :  { %438 = vsyncpa [#allocation4], 1 }
 0x16e   :  { %440 = vsyncpa [#allocation4 + $0x1], 1 }

</bundles_post_ra>
